<compile_context>
chip_gen: v5e
topology: v5e:2x2
jax: 0.10.0
libtpu: 0.0.40
codegen_flags: <defaults>
</compile_context>

<pallas_src>
import functools

import jax
import jax.numpy as jnp
from jax import lax
from jax.experimental import pallas as pl
from jax.experimental.pallas import tpu as pltpu


def _make_divisible(v, divisor=8, min_value=None):
    if min_value is None:
        min_value = divisor
    new_v = max(min_value, int(v + divisor / 2) // divisor * divisor)
    if new_v < 0.9 * v:
        new_v += divisor
    return new_v


def _round_up(x, m):
    return ((x + m - 1) // m) * m


def fused_mbconv_kernel(x_ref, w1_ref, b1_ref, w2_ref, b2_ref, o_ref, patches_ref,
                        *, cin, shifts, l_out, use_res_connect):
    """One grid step = one batch element, channels-on-sublanes / flat-spatial-on-lanes.

    x_ref       : (Cin, L_in)     pad-2 input, spatial flattened (row stride W+4), zero-padded to L_in
    w1_ref      : (Cexp, 9*Cin)   3x3 conv weights * BN1 scale (tap-major, cin-minor columns)
    b1_ref      : (Cexp, 1)       folded BN1 bias
    w2_ref      : (Cout, Cexp)    1x1 conv weights * BN2 scale
    b2_ref      : (Cout, 1)       folded BN2 bias
    o_ref       : (Cout, L_out)   output on the padded-flat grid (lane-dense, 128-multiple)
    patches_ref : (9*Cin, L_out)  VMEM scratch holding the in-kernel im2col slab
    """
    xp = x_ref[...]                                        # (Cin, L_in), one VMEM load

    # --- in-kernel im2col: 9 static lane-offset slices of the flat padded image ---
    taps = []
    for t, s in enumerate(shifts):
        tap = xp[:, s:s + l_out]                           # (Cin, L_out)
        patches_ref[t * cin:(t + 1) * cin, :] = tap
        taps.append(tap)

    # --- 3x3 conv (stride 1, pad 1): one MXU call, K = 9*Cin, BN1 scale pre-folded ---
    acc = jnp.dot(w1_ref[...], patches_ref[...],
                  preferred_element_type=jnp.float32)      # (Cexp, L_out)

    # --- BN1 bias + SiLU (full-lane f32 VPU/EUP work) ---
    y = acc + b1_ref[...]
    y = y * jax.nn.sigmoid(y)

    # --- 1x1 conv + BN2 bias (no activation), BN2 scale pre-folded ---
    z = jnp.dot(w2_ref[...], y, preferred_element_type=jnp.float32)   # (Cout, L_out)
    z = z + b2_ref[...]

    # --- residual: the center tap (kh=kw=1) IS the original input at the valid positions ---
    if use_res_connect:
        z = z + taps[4]

    o_ref[...] = z.astype(o_ref.dtype)


def fused_mbconv_pallas(x_nchw, w1_oihw, s1, b1, w2_oihw, s2, b2, *, use_res_connect=True):
    """x_nchw: (N, Cin, H, W) float32 -> (N, Cout, H, W).

    w1_oihw : (Cexp, Cin, 3, 3) 3x3 conv weights (PyTorch OIHW)
    w2_oihw : (Cout, Cexp, 1, 1) 1x1 conv weights
    s1/b1, s2/b2: folded BatchNorm scale/bias (inference mode)
    """
    N, Cin, H, W = x_nchw.shape
    Cexp = w1_oihw.shape[0]
    Cout = w2_oihw.shape[0]

    WP = W + 4                                   # pad-2 row stride
    HP = H + 4
    flat_len = HP * WP                           # 400 for 16x16
    # last valid flat output position is H*WP + W; round lane widths to 128.
    l_out = _round_up(H * WP + W + 1, 128)       # 384
    max_shift = 2 * WP + 2                       # 42
    l_in = _round_up(max(flat_len, l_out + max_shift), 128)   # 512
    shifts = tuple(kh * WP + kw for kh in range(3) for kw in range(3))

    # --- glue (tiny): pad by 2, flatten spatial, zero-pad lanes to l_in (~16 KB total) ---
    x_pad = jnp.pad(x_nchw, ((0, 0), (0, 0), (2, 2), (2, 2)))          # (N, Cin, HP, WP)
    x_flat = x_pad.reshape(N, Cin, flat_len)
    if l_in > flat_len:
        x_flat = jnp.pad(x_flat, ((0, 0), (0, 0), (0, l_in - flat_len)))

    # --- fold BN scales into conv weights; repack w1 to tap-major / cin-minor columns ---
    w1_scaled = w1_oihw * s1[:, None, None, None]                      # (Cexp, Cin, 3, 3)
    w1_flat = jnp.transpose(w1_scaled, (0, 2, 3, 1)).reshape(Cexp, 9 * Cin)
    w2_mat = w2_oihw[:, :, 0, 0] * s2[:, None]                         # (Cout, Cexp)
    b1_c = b1.reshape(Cexp, 1)
    b2_c = b2.reshape(Cout, 1)

    kernel = functools.partial(
        fused_mbconv_kernel, cin=Cin, shifts=shifts, l_out=l_out,
        use_res_connect=use_res_connect)

    out = pl.pallas_call(
        kernel,
        out_shape=jax.ShapeDtypeStruct((N, Cout, l_out), x_nchw.dtype),
        grid_spec=pltpu.PrefetchScalarGridSpec(
            num_scalar_prefetch=0,
            grid=(N,),
            in_specs=[
                pl.BlockSpec((None, Cin, l_in), lambda n: (n, 0, 0)),   # squeezed batch dim
                pl.BlockSpec((Cexp, 9 * Cin), lambda n: (0, 0)),
                pl.BlockSpec((Cexp, 1), lambda n: (0, 0)),
                pl.BlockSpec((Cout, Cexp), lambda n: (0, 0)),
                pl.BlockSpec((Cout, 1), lambda n: (0, 0)),
            ],
            out_specs=pl.BlockSpec((None, Cout, l_out), lambda n: (n, 0, 0)),
            scratch_shapes=[pltpu.VMEM((9 * Cin, l_out), jnp.float32)],
        ),
        compiler_params=pltpu.CompilerParams(
            dimension_semantics=("parallel",)),
    )(x_flat, w1_flat, b1_c, w2_mat, b2_c)

    # --- crop the valid positions p = (h+1)*WP + (w+1) out of the padded-flat grid ---
    out_grid = out[:, :, :(H + 1) * WP].reshape(N, Cout, H + 1, WP)
    return out_grid[:, :, 1:, 1:W + 1]


def reference_forward(x_nchw, w1_oihw, s1, b1, w2_oihw, s2, b2):
    """Pure-JAX reference matching the PyTorch FusedMBConv forward (eval mode)."""
    y = lax.conv_general_dilated(
        x_nchw, w1_oihw, window_strides=(1, 1), padding=((1, 1), (1, 1)),
        dimension_numbers=('NCHW', 'OIHW', 'NCHW'))
    y = y * s1[None, :, None, None] + b1[None, :, None, None]
    y = y * jax.nn.sigmoid(y)                                   # SiLU
    z = lax.conv_general_dilated(
        y, w2_oihw, window_strides=(1, 1), padding=((0, 0), (0, 0)),
        dimension_numbers=('NCHW', 'OIHW', 'NCHW'))
    z = z * s2[None, :, None, None] + b2[None, :, None, None]
    return z + x_nchw                                           # residual


if __name__ == "__main__":
    # FusedMBConvConfig(expand_ratio=4, kernel=3, stride=1, in=4, out=4)
    N, Cin, H, W = 2, 4, 16, 16
    Cout = 4
    Cexp = _make_divisible(Cin * 4, 8)   # 16
    eps = 1e-5

    key = jax.random.PRNGKey(0)
    keys = jax.random.split(key, 10)

    x = jax.random.normal(keys[0], (N, Cin, H, W), jnp.float32)

    # conv weights (PyTorch OIHW convention)
    w1_oihw = jax.random.normal(keys[1], (Cexp, Cin, 3, 3), jnp.float32) * 0.1
    w2_oihw = jax.random.normal(keys[2], (Cout, Cexp, 1, 1), jnp.float32) * 0.1

    # BN1 params (inference / running stats)
    g1 = jax.random.normal(keys[3], (Cexp,), jnp.float32) * 0.1 + 1.0
    be1 = jax.random.normal(keys[4], (Cexp,), jnp.float32) * 0.1
    m1 = jax.random.normal(keys[5], (Cexp,), jnp.float32) * 0.1
    v1 = jax.random.uniform(keys[6], (Cexp,), jnp.float32, 0.5, 1.5)

    # BN2 params
    g2 = jax.random.normal(keys[7], (Cout,), jnp.float32) * 0.1 + 1.0
    be2 = jax.random.normal(keys[8], (Cout,), jnp.float32) * 0.1
    m2 = jnp.zeros((Cout,), jnp.float32)
    v2 = jax.random.uniform(keys[9], (Cout,), jnp.float32, 0.5, 1.5)

    # fold BN into scale/bias
    s1 = g1 / jnp.sqrt(v1 + eps)
    b1 = be1 - m1 * s1
    s2 = g2 / jnp.sqrt(v2 + eps)
    b2 = be2 - m2 * s2

    use_res = (1 == 1) and (Cin == Cout)   # stride==1 and Cin==Cout
    out = fused_mbconv_pallas(x, w1_oihw, s1, b1, w2_oihw, s2, b2,
                              use_res_connect=use_res)
    out = jax.block_until_ready(out)

    ref = reference_forward(x, w1_oihw, s1, b1, w2_oihw, s2, b2)
    ref = jax.block_until_ready(ref)

    assert out.shape == (N, Cout, H, W), out.shape
    max_err = float(jnp.max(jnp.abs(out - ref)))
    assert max_err < 1e-3, f"max abs error {max_err}"

    print("KERNEL_OK")
</pallas_src>

<mosaic_0001>
module attributes {stable_mosaic.version = 11 : i64} {
  func.func @fused_mbconv_kernel(%arg0: i32, %arg1: memref<1x4x512xf32, #tpu.memory_space<vmem>>, %arg2: memref<16x36xf32, #tpu.memory_space<vmem>>, %arg3: memref<16x1xf32, #tpu.memory_space<vmem>>, %arg4: memref<4x16xf32, #tpu.memory_space<vmem>>, %arg5: memref<4x1xf32, #tpu.memory_space<vmem>>, %arg6: memref<1x4x384xf32, #tpu.memory_space<vmem>>, %arg7: memref<36x384xf32, #tpu.memory_space<vmem>>) attributes {dimension_semantics = [#tpu.dimension_semantics<parallel>], iteration_bounds = array<i64: 2>, scalar_prefetch = 0 : i64, scratch_operands = 1 : i64, tpu.core_type = #tpu.core_type<tc>, window_params = [{transform_indices = @transform_0, window_bounds = array<i64: 1, 4, 512>}, {pipeline_mode = #tpu.pipeline_mode<synchronous>, transform_indices = @transform_1, window_bounds = array<i64: 16, 36>}, {pipeline_mode = #tpu.pipeline_mode<synchronous>, transform_indices = @transform_2, window_bounds = array<i64: 16, 1>}, {pipeline_mode = #tpu.pipeline_mode<synchronous>, transform_indices = @transform_3, window_bounds = array<i64: 4, 16>}, {pipeline_mode = #tpu.pipeline_mode<synchronous>, transform_indices = @transform_4, window_bounds = array<i64: 4, 1>}, {transform_indices = @transform_5, window_bounds = array<i64: 1, 4, 384>}]} {
    %c0 = arith.constant 0 : index
    %c0_0 = arith.constant 0 : index
    %c0_1 = arith.constant 0 : index
    %0 = vector.load %arg1[%c0, %c0_0, %c0_1] : memref<1x4x512xf32, #tpu.memory_space<vmem>>, vector<1x4x512xf32>
    %1 = vector.shape_cast %0 : vector<1x4x512xf32> to vector<4x512xf32>
    %2 = vector.extract_strided_slice %1 {offsets = [0, 0], sizes = [4, 384], strides = [1, 1]} : vector<4x512xf32> to vector<4x384xf32>
    %c0_2 = arith.constant 0 : index
    %c0_3 = arith.constant 0 : index
    %3 = vector.load %arg7[%c0_2, %c0_3] : memref<36x384xf32, #tpu.memory_space<vmem>>, vector<4x384xf32>
    tpu.vector_store %arg7[%c0_2, %c0_3], %2 {strides = array<i32>} : memref<36x384xf32, #tpu.memory_space<vmem>>, vector<4x384xf32>,
    %4 = vector.extract_strided_slice %1 {offsets = [0, 1], sizes = [4, 384], strides = [1, 1]} : vector<4x512xf32> to vector<4x384xf32>
    %c4 = arith.constant 4 : index
    %c0_4 = arith.constant 0 : index
    %5 = vector.load %arg7[%c4, %c0_4] : memref<36x384xf32, #tpu.memory_space<vmem>>, vector<4x384xf32>
    tpu.vector_store %arg7[%c4, %c0_4], %4 {strides = array<i32>} : memref<36x384xf32, #tpu.memory_space<vmem>>, vector<4x384xf32>,
    %6 = vector.extract_strided_slice %1 {offsets = [0, 2], sizes = [4, 384], strides = [1, 1]} : vector<4x512xf32> to vector<4x384xf32>
    %c8 = arith.constant 8 : index
    %c0_5 = arith.constant 0 : index
    %7 = vector.load %arg7[%c8, %c0_5] : memref<36x384xf32, #tpu.memory_space<vmem>>, vector<4x384xf32>
    tpu.vector_store %arg7[%c8, %c0_5], %6 {strides = array<i32>} : memref<36x384xf32, #tpu.memory_space<vmem>>, vector<4x384xf32>,
    %8 = vector.extract_strided_slice %1 {offsets = [0, 20], sizes = [4, 384], strides = [1, 1]} : vector<4x512xf32> to vector<4x384xf32>
    %c12 = arith.constant 12 : index
    %c0_6 = arith.constant 0 : index
    %9 = vector.load %arg7[%c12, %c0_6] : memref<36x384xf32, #tpu.memory_space<vmem>>, vector<4x384xf32>
    tpu.vector_store %arg7[%c12, %c0_6], %8 {strides = array<i32>} : memref<36x384xf32, #tpu.memory_space<vmem>>, vector<4x384xf32>,
    %10 = vector.extract_strided_slice %1 {offsets = [0, 21], sizes = [4, 384], strides = [1, 1]} : vector<4x512xf32> to vector<4x384xf32>
    %c16 = arith.constant 16 : index
    %c0_7 = arith.constant 0 : index
    %11 = vector.load %arg7[%c16, %c0_7] : memref<36x384xf32, #tpu.memory_space<vmem>>, vector<4x384xf32>
    tpu.vector_store %arg7[%c16, %c0_7], %10 {strides = array<i32>} : memref<36x384xf32, #tpu.memory_space<vmem>>, vector<4x384xf32>,
    %12 = vector.extract_strided_slice %1 {offsets = [0, 22], sizes = [4, 384], strides = [1, 1]} : vector<4x512xf32> to vector<4x384xf32>
    %c20 = arith.constant 20 : index
    %c0_8 = arith.constant 0 : index
    %13 = vector.load %arg7[%c20, %c0_8] : memref<36x384xf32, #tpu.memory_space<vmem>>, vector<4x384xf32>
    tpu.vector_store %arg7[%c20, %c0_8], %12 {strides = array<i32>} : memref<36x384xf32, #tpu.memory_space<vmem>>, vector<4x384xf32>,
    %14 = vector.extract_strided_slice %1 {offsets = [0, 40], sizes = [4, 384], strides = [1, 1]} : vector<4x512xf32> to vector<4x384xf32>
    %c24 = arith.constant 24 : index
    %c0_9 = arith.constant 0 : index
    %15 = vector.load %arg7[%c24, %c0_9] : memref<36x384xf32, #tpu.memory_space<vmem>>, vector<4x384xf32>
    tpu.vector_store %arg7[%c24, %c0_9], %14 {strides = array<i32>} : memref<36x384xf32, #tpu.memory_space<vmem>>, vector<4x384xf32>,
    %16 = vector.extract_strided_slice %1 {offsets = [0, 41], sizes = [4, 384], strides = [1, 1]} : vector<4x512xf32> to vector<4x384xf32>
    %c28 = arith.constant 28 : index
    %c0_10 = arith.constant 0 : index
    %17 = vector.load %arg7[%c28, %c0_10] : memref<36x384xf32, #tpu.memory_space<vmem>>, vector<4x384xf32>
    tpu.vector_store %arg7[%c28, %c0_10], %16 {strides = array<i32>} : memref<36x384xf32, #tpu.memory_space<vmem>>, vector<4x384xf32>,
    %18 = vector.extract_strided_slice %1 {offsets = [0, 42], sizes = [4, 384], strides = [1, 1]} : vector<4x512xf32> to vector<4x384xf32>
    %c32 = arith.constant 32 : index
    %c0_11 = arith.constant 0 : index
    %19 = vector.load %arg7[%c32, %c0_11] : memref<36x384xf32, #tpu.memory_space<vmem>>, vector<4x384xf32>
    tpu.vector_store %arg7[%c32, %c0_11], %18 {strides = array<i32>} : memref<36x384xf32, #tpu.memory_space<vmem>>, vector<4x384xf32>,
    %c0_12 = arith.constant 0 : index
    %c0_13 = arith.constant 0 : index
    %20 = vector.load %arg2[%c0_12, %c0_13] : memref<16x36xf32, #tpu.memory_space<vmem>>, vector<16x36xf32>
    %c0_14 = arith.constant 0 : index
    %c0_15 = arith.constant 0 : index
    %21 = vector.load %arg7[%c0_14, %c0_15] : memref<36x384xf32, #tpu.memory_space<vmem>>, vector<36x384xf32>
    %cst = arith.constant dense<0.000000e+00> : vector<16x384xf32>
    %22 = tpu.matmul %20, %21, %cst {dimension_numbers = #tpu.dot_dimension_numbers<[1], [0], [0], [1], [0, 0, 1, 1], [], []>} : vector<16x36xf32>, vector<36x384xf32>, vector<16x384xf32> -> vector<16x384xf32>
    %c0_16 = arith.constant 0 : index
    %c0_17 = arith.constant 0 : index
    %23 = vector.load %arg3[%c0_16, %c0_17] : memref<16x1xf32, #tpu.memory_space<vmem>>, vector<16x1xf32>
    %24 = vector.broadcast %23 : vector<16x1xf32> to vector<16x384xf32>
    %25 = arith.addf %22, %24 : vector<16x384xf32>
    %26 = arith.negf %25 : vector<16x384xf32>
    %27 = math.exp %26 : vector<16x384xf32>
    %cst_18 = arith.constant 1.000000e+00 : f32
    %28 = vector.broadcast %cst_18 : f32 to vector<16x384xf32>
    %29 = arith.addf %28, %27 : vector<16x384xf32>
    %30 = arith.divf %28, %29 : vector<16x384xf32>
    %31 = arith.mulf %25, %30 : vector<16x384xf32>
    %c0_19 = arith.constant 0 : index
    %c0_20 = arith.constant 0 : index
    %32 = vector.load %arg4[%c0_19, %c0_20] : memref<4x16xf32, #tpu.memory_space<vmem>>, vector<4x16xf32>
    %cst_21 = arith.constant dense<0.000000e+00> : vector<4x384xf32>
    %33 = tpu.matmul %32, %31, %cst_21 {dimension_numbers = #tpu.dot_dimension_numbers<[1], [0], [0], [1], [0, 0, 1, 1], [], []>} : vector<4x16xf32>, vector<16x384xf32>, vector<4x384xf32> -> vector<4x384xf32>
    %c0_22 = arith.constant 0 : index
    %c0_23 = arith.constant 0 : index
    %34 = vector.load %arg5[%c0_22, %c0_23] : memref<4x1xf32, #tpu.memory_space<vmem>>, vector<4x1xf32>
    %35 = vector.broadcast %34 : vector<4x1xf32> to vector<4x384xf32>
    %36 = arith.addf %33, %35 : vector<4x384xf32>
    %37 = arith.addf %36, %10 : vector<4x384xf32>
    %c0_24 = arith.constant 0 : index
    %c0_25 = arith.constant 0 : index
    %c0_26 = arith.constant 0 : index
    %38 = vector.load %arg6[%c0_24, %c0_25, %c0_26] : memref<1x4x384xf32, #tpu.memory_space<vmem>>, vector<1x4x384xf32>
    %39 = vector.shape_cast %38 : vector<1x4x384xf32> to vector<4x384xf32>
    %40 = vector.shape_cast %37 : vector<4x384xf32> to vector<1x4x384xf32>
    tpu.vector_store %arg6[%c0_24, %c0_25, %c0_26], %40 {strides = array<i32>} : memref<1x4x384xf32, #tpu.memory_space<vmem>>, vector<1x4x384xf32>,
    return
  }
  func.func @transform_0(%arg0: i32) -> (i32, i32, i32) {
    %c0_i32 = arith.constant 0 : i32
    %c0_i32_0 = arith.constant 0 : i32
    %c0_i32_1 = arith.constant 0 : i32
    return %arg0, %c0_i32, %c0_i32_0 : i32, i32, i32
  }
  func.func @transform_1(%arg0: i32) -> (i32, i32) {
    %c0_i32 = arith.constant 0 : i32
    %c0_i32_0 = arith.constant 0 : i32
    %c0_i32_1 = arith.constant 0 : i32
    return %c0_i32, %c0_i32_0 : i32, i32
  }
  func.func @transform_2(%arg0: i32) -> (i32, i32) {
    %c0_i32 = arith.constant 0 : i32
    %c0_i32_0 = arith.constant 0 : i32
    %c0_i32_1 = arith.constant 0 : i32
    return %c0_i32, %c0_i32_0 : i32, i32
  }
  func.func @transform_3(%arg0: i32) -> (i32, i32) {
    %c0_i32 = arith.constant 0 : i32
    %c0_i32_0 = arith.constant 0 : i32
    %c0_i32_1 = arith.constant 0 : i32
    return %c0_i32, %c0_i32_0 : i32, i32
  }
  func.func @transform_4(%arg0: i32) -> (i32, i32) {
    %c0_i32 = arith.constant 0 : i32
    %c0_i32_0 = arith.constant 0 : i32
    %c0_i32_1 = arith.constant 0 : i32
    return %c0_i32, %c0_i32_0 : i32, i32
  }
  func.func @transform_5(%arg0: i32) -> (i32, i32, i32) {
    %c0_i32 = arith.constant 0 : i32
    %c0_i32_0 = arith.constant 0 : i32
    %c0_i32_1 = arith.constant 0 : i32
    return %arg0, %c0_i32, %c0_i32_0 : i32, i32, i32
  }
}

</mosaic_0001>

<bundles_post_ra>
// kernel: tpu_custom_call.1
= control target key start
LH: loop header
LB: loop body
LE: loop exit
PB: predicated region body
PF: predicated region fallthrough
CT: control target
= control target key end

     0   :  { %10 = vsyncpa [#allocation4], 0  ;;  %s1470_s0 = inlined_call_operand.hbm [shape: f32[2,4,512], index: 0, kind: input, shape index: {}]   ;;  %s1471_s1 = inlined_call_operand.vmem [shape: f32[16,36], index: 1, kind: input, shape index: {}]   ;;  %s1472_s2 = inlined_call_operand.vmem [shape: f32[16,1], index: 2, kind: input, shape index: {}]   ;;  %s1473_s3 = inlined_call_operand.vmem [shape: f32[4,16], index: 3, kind: input, shape index: {}]   ;;  %s1474_s4 = inlined_call_operand.vmem [shape: f32[4,1], index: 4, kind: input, shape index: {}]   ;;  %s1475_s5 = inlined_call_operand.hbm [shape: f32[2,4,384], index: 5, kind: output, shape index: {}]  }
   0x1   :  { %12 = vsyncpa [#allocation4 + $0x1], 0 }
   0x2   :  { %13 = vsyncpa [#allocation5], 0 }
   0x3   :  { %15 = vsyncpa [#allocation5 + $0x1], 0  ;;  %s1138_s18 = smov 0   ;;  %s1140_s19 = smov 0  }
   0x4   :  { %s1142_s20 = smov 0   ;;  %s1144_s21 = smov 0  }
   0x5 LB: > { %s1159_s22 = sadd.s32 4294967295, %s1097_s21   ;;  %s887_s23 = sadd.s32 4294967294, %s1097_s21   ;;  %s1097_s21 = sphi %s1144_s21, %s1491_s21   ;;  %s1093_s20 = sphi %s1142_s20, %s1490_s20   ;;  %s1089_s19 = sphi %s1140_s19, %s1489_s19   ;;  %s1085_s18 = sphi %s1138_s18, %s1488_s18  }
   0x6   : > { %s1163_s24 = sadd.s32 1, %s1097_s21   ;;  %s28_s25 = sadd.s32 1, %s1093_s20 }
   0x7   : > { %s25_s26 = ssub.s32 %s1097_s21, %s1163_s24  ;;  %p35_p0 = scmp.ne.s32.totalorder %s1093_s20, %s1089_s19 }
   0x8   : > { %p26_p1 = scmp.eq.s32.totalorder %s25_s26, 0  ;;  %p36_p2 = scmp.eq.s32.totalorder %s1097_s21, 0 }
   0x9   : > { %p41_p3 = scmp.ne.s32.totalorder %s1089_s19, %s1085_s18  ;;  %p42_p4 = scmp.eq.s32.totalorder %s1159_s22, 0 }
   0xa   : > { %s1175_s27 = scalar_select %p26_p1, %s1093_s20, %s28_s25  }
   0xb   : > { %p1177_p5 = por %p36_p2, %p35_p0  ;;  %p1181_p6 = por %p42_p4, %p41_p3 }
   0xc   : > { %p149_p7 = scmp.eq.s32.totalorder %s1159_s22, 1  ;;  %p155_p8 = scmp.eq.s32.totalorder %s887_s23, 1 }
   0xd   : > { %p931_p10 = scmp.lt.s32.totalorder %s1097_s21, 2  ;;  %s187_s7 = sand.u32 1, %s1093_s20  }
   0xe   : > { %p1188_p11 = por %p149_p7, %p35_p0  ;;  %p1192_p12 = por %p155_p8, %p41_p3 }
   0xf   : > { %s916_s8 = sshll.u32 %s1097_s21, 4  ;;  %s890_s9 = sshll.u32 %s187_s7, 4 }
  0x10   : > { %s196_s12 = scalar_lea.hbm %s1470_s0, %s916_s8  ;;  %s191_s14 = scalar_lea.vmem [#allocation3], %s890_s9 }
  0x11   : > { %s198_s13 = sshll.u32 %s196_s12, 4  ;;  %s200_s15 = sshll.u32 %s191_s14, 4  ;;  %s199_s13 = int_to_ptr.hbm [resolvable:$true] %s198_s13  ;;  %s201_s15 = int_to_ptr.vmem [resolvable:$true] %s200_s15 }
  0x12   : > { %p1203_p13 = pnand %p931_p10, %p1177_p5  ;;  %p893_p0 = scmp.ge.s32.totalorder %s1097_s21, 1 }
  0x13   : > { %p205_p1 = scmp.lt.s32.totalorder %s1097_s21, 3  ;;  %s188_s17 = scalar_lea.sflag [#allocation4], %s187_s7 }
  0x14   : > { %s1001_s23 = sshra.s32 %s199_s13, 4  ;;  %p1005_p3 = pneg %p1203_p13  ;;  %s1002_s23 = int_to_ptr.hbm [resolvable:$true] %s1001_s23 }
  0x15   : > { %s1003_s25 = scalar_lea.hbm %s1002_s23, 16  ;;  %s1008_s28 = scalar_lea.hbm %s1470_s0, 32 }
  0x16   : > { %p1004_p2 = scmp.ne.s32.totalorder %s1002_s23, %s1003_s25  ;;  %p1009_p5 = scmp.lt.s32.totalorder %s1002_s23, %s1470_s0 }
  0x17   : > { %p1010_p8 = scmp.lt.s32.totalorder %s1008_s28, %s1003_s25 }
  0x18   : > { %p1006_p4 = pnand %p1005_p3, %p1004_p2 }
  0x19   : > { %p1011_p10 = por %p1010_p8, %p1009_p5 }
  0x1a   : > { %p1007_p7 = pneg %p1006_p4 }
  0x1c   : > { %p1012_p9 = pnand %p1011_p10, %p1007_p7 }
  0x1e   : > { %1015 = shalt.err (!%p1012_p9)
}
  0x1f   : > { %926 = dma.hbm_to_vmem [thread:$0]  (!%p1203_p13), %s199_s13, 256, %s201_s15, %s188_s17  }
  0x20   : > { %p206_p2 = pnand %p893_p0, %p205_p1 }
  0x21   : > { %s1224_s7 = sand.u32 (!%p206_p2), 1, %s1089_s19  }
  0x22   : > { %209 = sbr.rel (%p206_p2) target bundleno = 584 (0x248), region = 40  ;;  %s894_s11 = sshll.u32 (!%p206_p2), %s1224_s7, 4 }
  0x23   : > { %s212_s12 = scalar_lea.sflag (!%p206_p2), [#allocation4], %s1224_s7  ;;  %s215_s14 = scalar_lea.vmem (!%p206_p2), [#allocation3], %s894_s11 }
  0x27   : > { %1076 = dma.done.wait (%p1181_p6), %s212_s12, 256  }
  0x28   : > { %1078 = vsyncadd (%p1181_p6), %s212_s12, 4294967040  ;;  %v1232_v0 = vld [vmem:[%s215_s14] sm:$0xff]  ;;  %v1234_v1 = vld [vmem:[%s215_s14 + $0x8] sm:$0xff]  ;;  %s1099_s29 = smov 127   ;;  %s1100_s13 = smov 126   ;;  %vm275_vm0 = vcmask 1039360  }
  0x29   : > { %247 = vst [vmem:[#allocation1] ss:$2 sm:$0xff] %v1232_v0  ;;  %s1101_s15 = smov 108   ;;  %s1102_s16 = smov 107   ;;  %vm300_vm1 = vcmask 1031168   ;;  %vm351_vm2 = vcmask 875520  }
  0x2a   : > { %249 = vst [vmem:[#allocation1 + $0x10] ss:$2 sm:$0xff] %v1234_v1  ;;  %s1103_s17 = smov 106   ;;  %s1104_s23 = smov 88   ;;  %vm326_vm3 = vcmask 883712   ;;  %vm377_vm4 = vcmask 867328  }
  0x2b   : > { %s1105_s25 = smov 87   ;;  %s1106_s26 = smov 86   ;;  %vm428_vm5 = vcmask 711680   ;;  %vm402_vm6 = vcmask 719872   ;;  %vm453_vm7 = vcmask 703488   ;;  %vm499_vm8 = vcmask 1043456  }
  0x2c   : > { %vm492_vm9 = vcmask 293888   ;;  %vm705_vm15 = vcmask 130048  }
  0x30   : > { %v250_v2 = vld.sshfl [vmem:[#allocation1] sm:$0xff pattern:$0x75316420]  ;;  %v251_v3 = vld.sshfl [vmem:[#allocation1 + $0x8] sm:$0xff pattern:$0x75316420] }
  0x31   : > { %260 = vst [vmem:[#allocation1 + $0x1] ss:$2 sm:$0xff] %v1232_v0  ;;  %v252_v4 = vld.sshfl [vmem:[#allocation1 + $0x10] sm:$0xff pattern:$0x75316420] }
  0x32   : > { %256 = vst [vmem:[#allocation2 + $0x30] sm:$0xf] %v250_v2 }
  0x33   : > { %257 = vst [vmem:[#allocation2] sm:$0xf] %v251_v3 }
  0x34   : > { %262 = vst [vmem:[#allocation1 + $0x11] ss:$2 sm:$0xff] %v1234_v1 }
  0x35   : > { %258 = vst [vmem:[#allocation2 + $0x58] sm:$0xf] %v252_v4 }
  0x38   : > { %v264_v5 = vld.sshfl [vmem:[#allocation1 + $0x8] sm:$0xff pattern:$0x75316420]  ;;  %v263_v6 = vld.sshfl [vmem:[#allocation1] sm:$0xff pattern:$0x75316420] }
  0x39   : > { %269 = vrot.lane.b32.xlu0 %v264_v5, %s1099_s29  ;;  %267 = vrot.lane.b32.xlu2 %v263_v6, %s1099_s29  ;;  %285 = vst [vmem:[#allocation1] ss:$2 sm:$0xff] %v1232_v0 }
  0x3b   : > { %v1243_v7 = vld.sshfl [vmem:[#allocation1 + $0x10] sm:$0xff pattern:$0x75316420]  ;;  %v1245_v8 = vld.sshfl [vmem:[#allocation1 + $0x18] sm:$0xff pattern:$0x75316420] }
  0x3c   : > { %287 = vst [vmem:[#allocation1 + $0x10] ss:$2 sm:$0xff] %v1234_v1 }
  0x40   : > { %v288_v9 = vld.sshfl [vmem:[#allocation1] sm:$0xff pattern:$0x75316420]  ;;  %v289_v10 = vld.sshfl [vmem:[#allocation1 + $0x8] sm:$0xff pattern:$0x75316420] }
  0x41   : > { %292 = vrot.lane.b32.xlu1 %v288_v9, %s1100_s13  ;;  %294 = vrot.lane.b32.xlu2 %v289_v10, %s1100_s13  ;;  %311 = vst [vmem:[#allocation1 + $0x1] ss:$2 sm:$0xff] %v1232_v0 }
  0x43   : > { %v290_v11 = vld.sshfl [vmem:[#allocation1 + $0x10] sm:$0xff pattern:$0x75316420]  ;;  %v1251_v12 = vld.sshfl [vmem:[#allocation1 + $0x18] sm:$0xff pattern:$0x75316420] }
  0x44   : > { %313 = vst [vmem:[#allocation1 + $0x11] ss:$2 sm:$0xff] %v1234_v1  ;;  %296 = vrot.lane.b32.xlu0 %v290_v11, %s1100_s13 }
  0x48   : > { %v315_v13 = vld.sshfl [vmem:[#allocation1 + $0x8] sm:$0xff pattern:$0x75316420]  ;;  %v314_v14 = vld.sshfl [vmem:[#allocation1] sm:$0xff pattern:$0x75316420] }
  0x49   : > { %320 = vrot.lane.b32.xlu1 %v315_v13, %s1101_s15  ;;  %336 = vst [vmem:[#allocation1] ss:$2 sm:$0xff] %v1232_v0 }
  0x4b   : > { %v316_v15 = vld.sshfl [vmem:[#allocation1 + $0x10] sm:$0xff pattern:$0x75316420]  ;;  %v317_v16 = vld.sshfl [vmem:[#allocation1 + $0x18] sm:$0xff pattern:$0x75316420] }
  0x4c   : > { %338 = vst [vmem:[#allocation1 + $0x10] ss:$2 sm:$0xff] %v1234_v1  ;;  %318 = vrot.lane.b32.xlu0 %v314_v14, %s1101_s15 }
  0x50   : > { %v339_v17 = vld.sshfl [vmem:[#allocation1] sm:$0xff pattern:$0x75316420]  ;;  %v340_v18 = vld.sshfl [vmem:[#allocation1 + $0x8] sm:$0xff pattern:$0x75316420] }
  0x51   : > { %322 = vrot.lane.b32.xlu1 %v316_v15, %s1101_s15  ;;  %362 = vst [vmem:[#allocation1 + $0x1] ss:$2 sm:$0xff] %v1232_v0  ;;  %v480_v15 = vld [vmem:[%s1472_s2] sm:$0xff] }
  0x53   : > { %v341_v19 = vld.sshfl [vmem:[#allocation1 + $0x10] sm:$0xff pattern:$0x75316420]  ;;  %v342_v20 = vld.sshfl [vmem:[#allocation1 + $0x18] sm:$0xff pattern:$0x75316420] }
  0x54   : > { %347 = vrot.lane.b32.xlu2 %v341_v19, %s1102_s16  ;;  %343 = vrot.lane.b32.xlu0 %v339_v17, %s1102_s16  ;;  %364 = vst [vmem:[#allocation1 + $0x11] ss:$2 sm:$0xff] %v1234_v1 }
  0x58   : > { %v366_v21 = vld.sshfl [vmem:[#allocation1 + $0x8] sm:$0xff pattern:$0x75316420]  ;;  %v365_v22 = vld.sshfl [vmem:[#allocation1] sm:$0xff pattern:$0x75316420] }
  0x59   : > { %345 = vrot.lane.b32.xlu1 %v340_v18, %s1102_s16  ;;  %387 = vst [vmem:[#allocation1] ss:$2 sm:$0xff] %v1232_v0 }
  0x5b   : > { %v367_v23 = vld.sshfl [vmem:[#allocation1 + $0x10] sm:$0xff pattern:$0x75316420]  ;;  %v368_v24 = vld.sshfl [vmem:[#allocation1 + $0x18] sm:$0xff pattern:$0x75316420] }
  0x5c   : > { %349 = vrot.lane.b32.xlu2 %v342_v20, %s1102_s16  ;;  %371 = vrot.lane.b32.xlu0 %v366_v21, %s1103_s17  ;;  %389 = vst [vmem:[#allocation1 + $0x10] ss:$2 sm:$0xff] %v1234_v1 }
  0x60   : > { %v390_v25 = vld.sshfl [vmem:[#allocation1] sm:$0xff pattern:$0x75316420]  ;;  %v391_v26 = vld.sshfl [vmem:[#allocation1 + $0x8] sm:$0xff pattern:$0x75316420] }
  0x61   : > { %394 = vrot.lane.b32.xlu1 %v390_v25, %s1104_s23  ;;  %413 = vst [vmem:[#allocation1 + $0x1] ss:$2 sm:$0xff] %v1232_v0 }
  0x63   : > { %v392_v27 = vld.sshfl [vmem:[#allocation1 + $0x10] sm:$0xff pattern:$0x75316420]  ;;  %v393_v28 = vld.sshfl [vmem:[#allocation1 + $0x18] sm:$0xff pattern:$0x75316420] }
  0x64   : > { %373 = vrot.lane.b32.xlu0 %v367_v23, %s1103_s17  ;;  %369 = vrot.lane.b32.xlu2 %v365_v22, %s1103_s17  ;;  %415 = vst [vmem:[#allocation1 + $0x11] ss:$2 sm:$0xff] %v1234_v1 }
  0x68   : > { %v417_v29 = vld.sshfl [vmem:[#allocation1 + $0x8] sm:$0xff pattern:$0x75316420]  ;;  %v416_v30 = vld.sshfl [vmem:[#allocation1] sm:$0xff pattern:$0x75316420] }
  0x69   : > { %396 = vrot.lane.b32.xlu1 %v391_v26, %s1104_s23  ;;  %438 = vst [vmem:[#allocation1] ss:$2 sm:$0xff] %v1232_v0 }
  0x6b   : > { %v418_v31 = vld.sshfl [vmem:[#allocation1 + $0x10] sm:$0xff pattern:$0x75316420]  ;;  %v419_v32 = vld.sshfl [vmem:[#allocation1 + $0x18] sm:$0xff pattern:$0x75316420] }
  0x6c   : > { %424 = vrot.lane.b32.xlu0 %v418_v31, %s1105_s25  ;;  %440 = vst [vmem:[#allocation1 + $0x10] ss:$2 sm:$0xff] %v1234_v1  ;;  %398 = vrot.lane.b32.xlu2 %v392_v27, %s1104_s23 }
  0x70   : > { %v441_v33 = vld.sshfl [vmem:[#allocation1] sm:$0xff pattern:$0x75316420]  ;;  %v442_v34 = vld.sshfl [vmem:[#allocation1 + $0x8] sm:$0xff pattern:$0x75316420] }
  0x71   : > { %400 = vrot.lane.b32.xlu1 %v393_v28, %s1104_s23  ;;  %769 = vst [vmem:[#allocation1] ss:$2 sm:$0xff] %v1232_v0 }
  0x73   : > { %v443_v35 = vld.sshfl [vmem:[#allocation1 + $0x10] sm:$0xff pattern:$0x75316420]  ;;  %v444_v36 = vld.sshfl [vmem:[#allocation1 + $0x18] sm:$0xff pattern:$0x75316420] }
  0x74   : > { %420 = vrot.lane.b32.xlu2 %v416_v30, %s1105_s25  ;;  %445 = vrot.lane.b32.xlu0 %v441_v33, %s1106_s26  ;;  %771 = vst [vmem:[#allocation1 + $0x10] ss:$2 sm:$0xff] %v1234_v1 }
  0x79   : > { %271 = vrot.lane.b32.xlu1 %v1243_v7, %s1099_s29 }
  0x7c   : > { %422 = vrot.lane.b32.xlu2 %v417_v29, %s1105_s25  ;;  %447 = vrot.lane.b32.xlu0 %v442_v34, %s1106_s26  ;;  %v463_v34 = vld [vmem:[%s1471_s1] sm:$0xff] }
  0x81   : > { %449 = vrot.lane.b32.xlu1 %v443_v35, %s1106_s26 }
  0x84   : > { %426 = vrot.lane.b32.xlu2 %v419_v32, %s1105_s25  ;;  %375 = vrot.lane.b32.xlu0 %v368_v24, %s1103_s17  ;;  %v481_v24 = vld [vmem:[%s1472_s2 + $0x8] sm:$0xff]  ;;  %s918_s25 = smul.u32 12, %s1159_s22  ;;  %s801_s22 = scalar_lea.sflag [#allocation5], %s1224_s7 }
  0x86   : > { %s812_s28 = scalar_lea.hbm %s1475_s5, %s918_s25 }
  0x87   : > { %s816_s11 = sshll.u32 %s812_s28, 4  ;;  %s817_s11 = int_to_ptr.hbm [resolvable:$true] %s816_s11 }
  0x88   : > { %s1045_s12 = sshra.s32 %s817_s11, 4  ;;  %s1046_s12 = int_to_ptr.hbm [resolvable:$true] %s1045_s12 }
  0x89   : > { %451 = vrot.lane.b32.xlu1 %v444_v36, %s1106_s26  ;;  %s1047_s14 = scalar_lea.hbm %s1046_s12, 12  ;;  %p1052_p0 = scmp.lt.s32.totalorder %s1046_s12, %s1475_s5 }
  0x8a   : > { %p1048_p6 = scmp.ne.s32.totalorder %s1046_s12, %s1047_s14 }
  0x8c   : > { %298 = vrot.lane.b32.xlu2 %v1251_v12, %s1100_s13  ;;  %324 = vrot.lane.b32.xlu0 %v317_v16, %s1101_s15  ;;  %v1107_v16 = vmov 0   ;;  %p1049_p9 = pnand %p1048_p6, %p1188_p11  ;;  %s1051_s15 = scalar_lea.hbm %s1475_s5, 24 }
  0x8d   : > { %975 = vset.pattern.permute.xlu0 %v1107_v16  ;;  %974 = vset.pattern.permute.xlu2 %v1107_v16  ;;  %p1053_p1 = scmp.lt.s32.totalorder %s1051_s15, %s1047_s14 }
  0x8e   : > { %976 = vset.pattern.permute.xlu1 %v1107_v16  ;;  %p1050_p13 = pneg %p1049_p9 }
  0x8f   : > { %p1054_p3 = por %p1053_p1, %p1052_p0 }
  0x91   : > { %273 = vrot.lane.b32.xlu1 %v1245_v8, %s1099_s29  ;;  %p1055_p4 = pnand %p1054_p3, %p1050_p13 }
  0x93   : > { %v268_v37 = vpop.permute.xlu2 %267 }
  0x94   : > { %484 = vperm.xlu0 %975, %v480_v15   ;;  %489 = vperm.xlu2 %974, %v481_v24   ;;  %v699_v15 = vld [vmem:[%s1474_s4] sm:$0xf] }
  0x99   : > { %702 = vperm.xlu1 %976, %v699_v15  }
  0x9b   : > { %v295_v38 = vpop.permute.xlu2 %294 }
  0xab   : > { %v1285_v39 = vpop.permute.xlu0 %269 }
  0xac   : > { %v276_v40 = vsel %vm275_vm0, %v268_v37, %v1285_v39 }
  0xad   : > { %282 = vst [vmem:[#allocation2 + $0x30] sm:$0xf0] %v276_v40 }
  0xae   : > { %v348_v41 = vpop.permute.xlu2 %347 }
  0xb3   : > { %v293_v42 = vpop.permute.xlu1 %292 }
  0xb4   : > { %v301_v43 = vsel %vm300_vm1, %v293_v42, %v295_v38  ;;  %v465_v37 = vld [vmem:[#allocation2 + $0x30] sm:$0xff] }
  0xb5   : > { %307 = vst [vmem:[#allocation2 + $0x18] sm:$0xf] %v301_v43 }
  0xb6   : > { %v297_v44 = vpop.permute.xlu0 %296  ;;  %v350_v45 = vpop.permute.xlu2 %349 }
  0xb7   : > { %v302_v46 = vsel %vm300_vm1, %v295_v38, %v297_v44  ;;  %v354_v47 = vsel %vm351_vm2, %v348_v41, %v350_v45 }
  0xb8   : > { %308 = vst [vmem:[#allocation2 + $0x50] sm:$0xf] %v302_v46 }
  0xb9   : > { %360 = vst [vmem:[#allocation2 + $0x40] sm:$0xf] %v354_v47 }
  0xbb   : > { %v321_v48 = vpop.permute.xlu1 %320 }
  0xbe   : > { %v319_v49 = vpop.permute.xlu0 %318  ;;  %v370_v50 = vpop.permute.xlu2 %369 }
  0xbf   : > { %v327_v51 = vsel %vm326_vm3, %v319_v49, %v321_v48 }
  0xc0   : > { %333 = vst [vmem:[#allocation2 + $0x18] sm:$0xf0] %v327_v51 }
  0xc3   : > { %v1293_v52 = vpop.permute.xlu1 %322 }
  0xc4   : > { %v328_v53 = vsel %vm326_vm3, %v321_v48, %v1293_v52 }
  0xc5   : > { %334 = vst [vmem:[#allocation2 + $0x50] sm:$0xf0] %v328_v53 }
  0xc6   : > { %v344_v54 = vpop.permute.xlu0 %343  ;;  %v399_v55 = vpop.permute.xlu2 %398 }
  0xc7   : > { %v468_v32 = vld [vmem:[#allocation2 + $0x18] sm:$0xff] }
  0xcb   : > { %v346_v56 = vpop.permute.xlu1 %345 }
  0xcc   : > { %v352_v57 = vsel %vm351_vm2, %v344_v54, %v346_v56  ;;  %v353_v58 = vsel %vm351_vm2, %v346_v56, %v348_v41 }
  0xcd   : > { %358 = vst [vmem:[#allocation2 + $0x8] sm:$0xf] %v352_v57 }
  0xce   : > { %359 = vst [vmem:[#allocation2 + $0x48] sm:$0xf] %v353_v58  ;;  %v372_v59 = vpop.permute.xlu0 %371  ;;  %v421_v60 = vpop.permute.xlu2 %420 }
  0xcf   : > { %v378_v61 = vsel %vm377_vm4, %v370_v50, %v372_v59 }
  0xd0   : > { %384 = vst [vmem:[#allocation2 + $0x8] sm:$0xf0] %v378_v61 }
  0xd3   : > { %v395_v62 = vpop.permute.xlu1 %394 }
  0xd6   : > { %v374_v63 = vpop.permute.xlu0 %373  ;;  %v423_v0 = vpop.permute.xlu2 %422 }
  0xd7   : > { %v379_v1 = vsel %vm377_vm4, %v372_v59, %v374_v63  ;;  %v429_v2 = vsel %vm428_vm5, %v421_v60, %v423_v0  ;;  %v471_v28 = vld [vmem:[#allocation2 + $0x8] sm:$0xff] }
  0xd8   : > { %385 = vst [vmem:[#allocation2 + $0x48] sm:$0xf0] %v379_v1 }
  0xd9   : > { %435 = vst [vmem:[#allocation2 + $0x20] sm:$0xf0] %v429_v2 }
  0xdb   : > { %v397_v3 = vpop.permute.xlu1 %396 }
  0xdc   : > { %v403_v4 = vsel %vm402_vm6, %v395_v62, %v397_v3  ;;  %v404_v5 = vsel %vm402_vm6, %v397_v3, %v399_v55 }
  0xdd   : > { %409 = vst [vmem:[#allocation2 + $0x20] sm:$0xf] %v403_v4 }
  0xde   : > { %v425_v6 = vpop.permute.xlu0 %424  ;;  %410 = vst [vmem:[#allocation2 + $0x10] sm:$0xf] %v404_v5  ;;  %v427_v7 = vpop.permute.xlu2 %426 }
  0xdf   : > { %v430_v8 = vsel %vm428_vm5, %v423_v0, %v425_v6  ;;  %v431_v9 = vsel %vm428_vm5, %v425_v6, %v427_v7  ;;  %v472_v38 = vld [vmem:[#allocation2 + $0x48] sm:$0xff] }
  0xe0   : > { %436 = vst [vmem:[#allocation2 + $0x10] sm:$0xf0] %v430_v8 }
  0xe1   : > { %437 = vst [vmem:[#allocation2 + $0x38] sm:$0xf0] %v431_v9 }
  0xe3   : > { %v401_v10 = vpop.permute.xlu1 %400 }
  0xe4   : > { %v405_v11 = vsel %vm402_vm6, %v399_v55, %v401_v10  ;;  %v474_v27 = vld [vmem:[#allocation2 + $0x20] sm:$0xff] }
  0xe5   : > { %411 = vst [vmem:[#allocation2 + $0x38] sm:$0xf] %v405_v11 }
  0xe6   : > { %v299_v12 = vpop.permute.xlu2 %298  ;;  %v446_v13 = vpop.permute.xlu0 %445 }
  0xe7   : > { %v303_v14 = vsel %vm300_vm1, %v297_v44, %v299_v12  ;;  %v475_v35 = vld [vmem:[#allocation2 + $0x10] sm:$0xff]  ;;  %v464_v44 = vld [vmem:[%s1471_s1 + $0x8] sm:$0xff] }
  0xe8   : > { %309 = vst [vmem:[#allocation2 + $0x68] sm:$0xf] %v303_v14 }
  0xeb   : > { %v272_v17 = vpop.permute.xlu1 %271 }
  0xec   : > { %v277_v18 = vsel %vm275_vm0, %v1285_v39, %v272_v17  ;;  %v469_v39 = vld [vmem:[#allocation2 + $0x50] sm:$0xff]  ;;  %v476_v45 = vld [vmem:[#allocation2 + $0x38] sm:$0xff] }
  0xed   : > { %283 = vst [vmem:[#allocation2] sm:$0xf0] %v277_v18 }
  0xee   : > { %v448_v19 = vpop.permute.xlu0 %447  ;;  %v490_v54 = vpop.permute.xlu2 %489 }
  0xef   : > { %v454_v20 = vsel %vm453_vm7, %v446_v13, %v448_v19 }
  0xf0   : > { %460 = vst [vmem:[#allocation2 + $0x60] sm:$0xf] %v454_v20 }
  0xf3   : > { %v450_v21 = vpop.permute.xlu1 %449 }
  0xf4   : > { %v455_v22 = vsel %vm453_vm7, %v448_v19, %v450_v21  ;;  %v466_v42 = vld [vmem:[#allocation2] sm:$0xff] }
  0xf5   : > { %461 = vst [vmem:[#allocation2 + $0x70] sm:$0xf] %v455_v22 }
  0xf6   : > { %v376_v23 = vpop.permute.xlu0 %375 }
  0xf7   : > { %v380_v25 = vsel %vm377_vm4, %v374_v63, %v376_v23  ;;  %v477_v26 = vld [vmem:[#allocation2 + $0x60] sm:$0xf] }
  0xf8   : > { %386 = vst [vmem:[#allocation2 + $0x40] sm:$0xf0] %v380_v25  ;;  %895 = vmatpush.msk.msra.mxu0 %vm499_vm8, %v477_v26 }
  0xfa   : > { %521 = vmatpush.msra.mxu0 %v474_v27 }
  0xfb   : > { %v452_v29 = vpop.permute.xlu1 %451 }
  0xfc   : > { %522 = vmatpush.msra.mxu0 %v471_v28  ;;  %v456_v30 = vsel %vm453_vm7, %v450_v21, %v452_v29  ;;  %v478_v31 = vld [vmem:[#allocation2 + $0x70] sm:$0xf]  ;;  %v774_v28 = vld.sshfl [vmem:[#allocation1 + $0x10] sm:$0xff pattern:$0x75316420] }
  0xfd   : > { %462 = vst [vmem:[#allocation2 + $0x28] sm:$0xf] %v456_v30  ;;  %898 = vmatpush.msk.msra.mxu1 %vm499_vm8, %v478_v31  ;;  %v775_v31 = vld.sshfl [vmem:[#allocation1 + $0x18] sm:$0xff pattern:$0x75316420]  ;;  %780 = vrot.lane.b32.xlu1 %v774_v28, %s1102_s16 }
  0xfe   : > { %523 = vmatpush.msra.mxu0 %v468_v32  ;;  %v325_v33 = vpop.permute.xlu0 %324  ;;  %v773_v32 = vld.sshfl [vmem:[#allocation1 + $0x8] sm:$0xff pattern:$0x75316420]  ;;  %782 = vrot.lane.b32.xlu0 %v775_v31, %s1102_s16 }
  0xff   : > { %v329_v36 = vsel %vm326_vm3, %v1293_v52, %v325_v33  ;;  %544 = vmatpush.msra.mxu1 %v475_v35  ;;  %v473_v46 = vld [vmem:[#allocation2 + $0x40] sm:$0xff]  ;;  %778 = vrot.lane.b32.xlu2 %v773_v32, %s1102_s16 }
 0x100   : > { %335 = vst [vmem:[#allocation2 + $0x68] sm:$0xf0] %v329_v36  ;;  %524 = vmatpush.msra.mxu0 %v465_v37 }
 0x101   : > { %896 = vmatmul.msk.f32.vlgmr.msra.gmra.mxu0 %vm492_vm9, %v463_v34  ;;  %545 = vmatpush.msra.mxu1 %v472_v38 }
 0x103   : > { %v274_v40 = vpop.permute.xlu1 %273  ;;  %546 = vmatpush.msra.mxu1 %v469_v39 }
 0x104   : > { %v278_v41 = vsel %vm275_vm0, %v272_v17, %v274_v40  ;;  %v479_v43 = vld [vmem:[#allocation2 + $0x28] sm:$0xf] }
 0x105   : > { %284 = vst [vmem:[#allocation2 + $0x58] sm:$0xf0] %v278_v41  ;;  %547 = vmatpush.msra.mxu1 %v466_v42  ;;  %901 = vmatpush.msk.msra.mxu2 %vm499_vm8, %v479_v43 }
 0x106   : > { %899 = vmatmul.msk.f32.vlgmr.msra.gmra.mxu1 %vm492_vm9, %v463_v34  ;;  %v485_v49 = vpop.permute.xlu0 %484 }
 0x107   : > { %567 = vmatpush.msra.mxu2 %v476_v45  ;;  %v470_v47 = vld [vmem:[#allocation2 + $0x68] sm:$0xff] }
 0x109   : > { %897 = vmatmul.msk.f32.gmra.mxu0 %vm492_vm9, %v464_v44  ;;  %568 = vmatpush.msra.mxu2 %v473_v46 }
 0x10b   : > { %569 = vmatpush.msra.mxu2 %v470_v47 }
 0x10c   : > { %v467_v48 = vld [vmem:[#allocation2 + $0x58] sm:$0xff] }
 0x10d   : > { %570 = vmatpush.msra.mxu2 %v467_v48 }
 0x10e   : > { %900 = vmatmul.msk.f32.gmra.mxu1 %vm492_vm9, %v464_v44  ;;  %902 = vmatmul.msk.f32.vlgmr.msra.gmra.mxu2 %vm492_vm9, %v463_v34 }
 0x116   : > { %903 = vmatmul.msk.f32.gmra.mxu2 %vm492_vm9, %v464_v44 }
 0x159   : > { %v779_v31 = vpop.permute.xlu2 %778 }
 0x17e   : > { %v526_v50 = vpop.f32.mrf.mxu0 }
 0x17f   : > { %v1335_v51 = vadd.f32 %v526_v50, %v485_v49 }
 0x181   : > { %v904_v52 = vmul.f32 -1.442695, %v1335_v51 }
 0x183   : > { %977 = vpow2.f32 %v904_v52  ;;  %v549_v53 = vpop.f32.mrf.mxu1 }
 0x184   : > { %v1338_v55 = vadd.f32 %v549_v53, %v485_v49 }
 0x186   : > { %v529_v56 = vpop.f32.mrf.mxu0  ;;  %v905_v57 = vmul.f32 -1.442695, %v1338_v55 }
 0x187   : > { %v1341_v58 = vadd.f32 %v529_v56, %v490_v54 }
 0x188   : > { %979 = vpow2.f32 %v905_v57 }
 0x189   : > { %v978_v59 = vpop.eup %977  ;;  %v907_v60 = vmul.f32 -1.442695, %v1341_v58 }
 0x18a   : > { %v596_v61 = vadd.f32 1.0, %v978_v59 }
 0x18b   : > { %981 = vpow2.f32 %v907_v60  ;;  %v552_v62 = vpop.f32.mrf.mxu1 }
 0x18c   : > { %983 = vrcp.f32 %v596_v61  ;;  %v1344_v63 = vadd.f32 %v552_v62, %v490_v54  ;;  %v611_v22 = vand.u32 2147483647, %v596_v61  ;;  %vm607_vm10 = vweird.f32 %v596_v61 }
 0x18d   : > { %v613_v27 = vand.u32 2147483648, %v596_v61 }
 0x18e   : > { %v980_v0 = vpop.eup %979  ;;  %v908_v1 = vmul.f32 -1.442695, %v1344_v63  ;;  %vm1376_vm12 = vcmp.eq.f32.partialorder %v611_v22, 8.507059e+37 }
 0x18f   : > { %v1347_v2 = vadd.f32 1.0, %v980_v0  ;;  %v614_v40 = vor.u32 1.1754944e-38, %v613_v27 }
 0x190   : > { %985 = vpow2.f32 %v908_v1 }
 0x191   : > { %v982_v3 = vpop.eup %981  ;;  %987 = vrcp.f32 %v1347_v2  ;;  %v572_v4 = vpop.f32.mrf.mxu2  ;;  %vm622_vm1 = vweird.f32 %v1347_v2  ;;  %v626_v41 = vand.u32 2147483647, %v1347_v2  ;;  %v628_v48 = vand.u32 2147483648, %v1347_v2 }
 0x192   : > { %v1350_v5 = vpop.eup %983  ;;  %v599_v6 = vadd.f32 1.0, %v982_v3  ;;  %v1352_v7 = vadd.f32 %v572_v4, %v485_v49 }
 0x193   : > { %v603_v8 = vmul.f32 %v1350_v5, %v596_v61  ;;  %vm608_vm11 = vweird.f32 %v1350_v5 }
 0x194   : > { %989 = vrcp.f32 %v599_v6  ;;  %v906_v9 = vmul.f32 -1.442695, %v1352_v7  ;;  %v656_v34 = vand.u32 2147483647, %v599_v6  ;;  %v658_v35 = vand.u32 2147483648, %v599_v6  ;;  %vm1386_vm0 = vmor %vm607_vm10, %vm608_vm11 }
 0x195   : > { %v604_v11 = vsub.f32 1.0, %v603_v8  ;;  %vm652_vm13 = vweird.f32 %v599_v6  ;;  %vm627_vm11 = vcmp.eq.f32.partialorder %v626_v41, 8.507059e+37 }
 0x196   : > { %v986_v10 = vpop.eup %985  ;;  %991 = vpow2.f32 %v906_v9  ;;  %vm657_vm5 = vcmp.eq.f32.partialorder %v656_v34, 8.507059e+37  ;;  %v659_v46 = vor.u32 1.1754944e-38, %v658_v35 }
 0x197   : > { %v1356_v12 = vpop.eup %987  ;;  %v1358_v13 = vadd.f32 1.0, %v986_v10  ;;  %v605_v19 = vmul.f32 %v1350_v5, %v604_v11 }
 0x198   : > { %v618_v14 = vmul.f32 %v1356_v12, %v1347_v2  ;;  %vm623_vm3 = vweird.f32 %v1356_v12 }
 0x199   : > { %993 = vrcp.f32 %v1358_v13  ;;  %v575_v16 = vpop.f32.mrf.mxu2  ;;  %v606_v29 = vadd.f32 %v1350_v5, %v605_v19  ;;  %v673_v47 = vand.u32 2147483648, %v1358_v13  ;;  %v671_v53 = vand.u32 2147483647, %v1358_v13  ;;  %vm1408_vm9 = vmor %vm622_vm1, %vm623_vm3 }
 0x19a   : > { %v990_v17 = vpop.eup %989  ;;  %v1366_v18 = vadd.f32 %v575_v16, %v490_v54  ;;  %v619_v20 = vsub.f32 1.0, %v618_v14  ;;  %v772_v54 = vld.sshfl [vmem:[#allocation1] sm:$0xff pattern:$0x75316420]  ;;  %vm667_vm7 = vweird.f32 %v1358_v13 }
 0x19b   : > { %v648_v21 = vmul.f32 %v990_v17, %v599_v6  ;;  %vm653_vm14 = vweird.f32 %v990_v17  ;;  %v610_v43 = vsel %vm1386_vm0, %v1350_v5, %v606_v29  ;;  %v674_v4 = vor.u32 1.1754944e-38, %v673_v47  ;;  %776 = vrot.lane.b32.xlu2 %v772_v54, %s1102_s16  ;;  %s917_s16 = smul.u32 12, %s1224_s7 }
 0x19c   : > { %v992_v23 = vpop.eup %991  ;;  %v909_v24 = vmul.f32 -1.442695, %v1366_v18  ;;  %v620_v30 = vmul.f32 %v1356_v12, %v619_v20  ;;  %vm654_vm4 = vmor %vm652_vm13, %vm653_vm14  ;;  %v615_v60 = vsel %vm1376_vm12, %v614_v40, %v610_v43  ;;  %v629_v5 = vor.u32 1.1754944e-38, %v628_v48 }
 0x19d   : > { %v1370_v25 = vadd.f32 1.0, %v992_v23  ;;  %v649_v26 = vsub.f32 1.0, %v648_v21  ;;  %v692_v6 = vmul.f32 %v615_v60, %v1335_v51  ;;  %vm672_vm12 = vcmp.eq.f32.partialorder %v671_v53, 8.507059e+37  ;;  %s242_s9 = scalar_lea.vmem [#allocation6], %s917_s16 }
 0x19e   : > { %995 = vpow2.f32 %v909_v24  ;;  %v621_v45 = vadd.f32 %v1356_v12, %v620_v30  ;;  %v703_v30 = vpop.permute.xlu1 %702  ;;  %s814_s10 = sshll.u32 %s242_s9, 4  ;;  %s815_s10 = int_to_ptr.vmem [resolvable:$true] %s814_s10 }
 0x19f   : > { %v994_v33 = vpop.eup %993  ;;  %997 = vrcp.f32 %v1370_v25  ;;  %v650_v37 = vmul.f32 %v990_v17, %v649_v26  ;;  %vm637_vm14 = vweird.f32 %v1370_v25  ;;  %v641_v20 = vand.u32 2147483647, %v1370_v25 }
 0x1a0   : > { %v663_v38 = vmul.f32 %v994_v33, %v1358_v13  ;;  %vm668_vm6 = vweird.f32 %v994_v33  ;;  %v625_v3 = vsel %vm1408_vm9, %v1356_v12, %v621_v45 }
 0x1a1   : > { %v651_v42 = vadd.f32 %v990_v17, %v650_v37  ;;  %vm669_vm10 = vmor %vm667_vm7, %vm668_vm6  ;;  %v630_v10 = vsel %vm627_vm11, %v629_v5, %v625_v3 }
 0x1a2   : > { %v664_v44 = vsub.f32 1.0, %v663_v38  ;;  %v693_v13 = vmul.f32 %v630_v10, %v1338_v55 }
 0x1a3   : > { %v655_v50 = vsel %vm654_vm4, %v990_v17, %v651_v42  ;;  %v643_v17 = vand.u32 2147483648, %v1370_v25  ;;  %v783_v42 = vpop.permute.xlu0 %782 }
 0x1a4   : > { %v996_v49 = vpop.eup %995  ;;  %v665_v52 = vmul.f32 %v994_v33, %v664_v44  ;;  %v660_v59 = vsel %vm657_vm5, %v659_v46, %v655_v50  ;;  %vm642_vm5 = vcmp.eq.f32.partialorder %v641_v20, 8.507059e+37 }
 0x1a5   : > { %v998_v56 = vpop.eup %997  ;;  %v601_v57 = vadd.f32 1.0, %v996_v49  ;;  %v695_v0 = vmul.f32 %v660_v59, %v1341_v58  ;;  %v698_v58 = vld [vmem:[%s1473_s3] sm:$0xf]  ;;  %v644_v23 = vor.u32 1.1754944e-38, %v643_v17 }
 0x1a6   : > { %v633_v62 = vmul.f32 %v998_v56, %v1370_v25  ;;  %v666_v1 = vadd.f32 %v994_v33, %v665_v52  ;;  %vm638_vm13 = vweird.f32 %v998_v56 }
 0x1a7   : > { %999 = vrcp.f32 %v601_v57  ;;  %723 = vmatpush.msra.mxu3 %v695_v0  ;;  %v688_v19 = vand.u32 2147483648, %v601_v57  ;;  %v686_v21 = vand.u32 2147483647, %v601_v57  ;;  %vm639_vm1 = vmor %vm637_vm14, %vm638_vm13  ;;  %vm682_vm3 = vweird.f32 %v601_v57 }
 0x1a8   : > { %v634_v2 = vsub.f32 1.0, %v633_v62  ;;  %v670_v8 = vsel %vm669_vm10, %v994_v33, %v666_v1  ;;  %v781_v33 = vpop.permute.xlu1 %780 }
 0x1a9   : > { %v675_v9 = vsel %vm672_vm12, %v674_v4, %v670_v8  ;;  %724 = vmatpush.msra.mxu3 %v692_v6  ;;  %v689_v24 = vor.u32 1.1754944e-38, %v688_v19  ;;  %vm687_vm6 = vcmp.eq.f32.partialorder %v686_v21, 8.507059e+37  ;;  %v785_v36 = vsel %vm351_vm2, %v779_v31, %v781_v33 }
 0x1aa   : > { %v696_v11 = vmul.f32 %v675_v9, %v1344_v63  ;;  %910 = vmatmul.msk.f32.vlgmr.msra.gmra.mxu3 %vm705_vm15, %v698_v58  ;;  %v635_v12 = vmul.f32 %v998_v56, %v634_v2  ;;  %v786_v45 = vsel %vm351_vm2, %v781_v33, %v783_v42 }
 0x1ac   : > { %743 = vmatpush.msrb.mxu3 %v696_v11  ;;  %v636_v51 = vadd.f32 %v998_v56, %v635_v12 }
 0x1ad   : > { %v1000_v14 = vpop.eup %999 }
 0x1ae   : > { %v678_v15 = vmul.f32 %v1000_v14, %v601_v57  ;;  %744 = vmatpush.msrb.mxu3 %v693_v13  ;;  %vm683_vm0 = vweird.f32 %v1000_v14  ;;  %v640_v55 = vsel %vm639_vm1, %v998_v56, %v636_v51 }
 0x1af   : > { %vm684_vm4 = vmor %vm682_vm3, %vm683_vm0  ;;  %v645_v27 = vsel %vm642_vm5, %v644_v23, %v640_v55 }
 0x1b0   : > { %v679_v16 = vsub.f32 1.0, %v678_v15  ;;  %v694_v29 = vmul.f32 %v645_v27, %v1352_v7 }
 0x1b2   : > { %v680_v63 = vmul.f32 %v1000_v14, %v679_v16  ;;  %911 = vmatmul.msk.f32.vlgmr.msrb.gmra.mxu3 %vm705_vm15, %v698_v58 }
 0x1b4   : > { %v681_v22 = vadd.f32 %v1000_v14, %v680_v63 }
 0x1b6   : > { %v685_v26 = vsel %vm684_vm4, %v1000_v14, %v681_v22 }
 0x1b7   : > { %v690_v28 = vsel %vm687_vm6, %v689_v24, %v685_v26 }
 0x1b8   : > { %v697_v25 = vmul.f32 %v690_v28, %v1366_v18 }
 0x1ba   : > { %763 = vmatpush.msra.mxu3 %v697_v25 }
 0x1bc   : > { %764 = vmatpush.msra.mxu3 %v694_v29 }
 0x1bd   : > { %912 = vmatmul.msk.f32.vlgmr.msra.gmra.mxu3 %vm705_vm15, %v698_v58 }
 0x1f5   : > { %v777_v34 = vpop.permute.xlu2 %776 }
 0x1f6   : > { %v784_v18 = vsel %vm351_vm2, %v777_v34, %v779_v31 }
 0x22d   : > { %v726_v32 = vpop.f32.mrf.mxu3 }
 0x22e   : > { %v727_v37 = vadd.f32 %v726_v32, %v703_v30 }
 0x230   : > { %v790_v40 = vadd.f32 %v784_v18, %v727_v37 }
 0x235   : > { %v746_v35 = vpop.f32.mrf.mxu3 }
 0x236   : > { %v747_v38 = vadd.f32 %v746_v35, %v703_v30 }
 0x238   : > { %v791_v39 = vadd.f32 %v785_v36, %v747_v38 }
 0x23a   : > { %v795_v7 = vrot.slane %v791_v39, 4 }
 0x23c   : > { %v796_v41 = vsel %vm499_vm8, %v790_v40, %v795_v7 }
 0x23d   : > { %798 = vst [vmem:[%s242_s9] sm:$0xff] %v796_v41 }
 0x240   : > { %v766_v43 = vpop.f32.mrf.mxu3 }
 0x241   : > { %v767_v44 = vadd.f32 %v766_v43, %v703_v30 }
 0x243   : > { %v792_v46 = vadd.f32 %v786_v45, %v767_v44 }
 0x245   : > { %799 = vst [vmem:[%s242_s9 + $0x8] sm:$0xf] %v792_v46 }
 0x246   : > { %1058 = shalt.err (!%p1055_p4)
}
 0x247   : > { %921 = dma.vmem_to_hbm [thread:$0]  (%p1188_p11), %s815_s10, 192, %s817_s11, %s801_s22  }
 0x248 PF: > { %s828_s7 = sand.u32 1, %s1085_s18   ;;  %p1487_p7 = scmp.ge.s32.totalorder %s1097_s21, 2 }
 0x249   : > { %s829_s16 = scalar_lea.sflag [#allocation5], %s828_s7 }
 0x24a   : > { %p928_p5 = pnand %p1487_p7, %p1192_p12 }
 0x24c   : > { %p929_p8 = pneg %p928_p5 }
 0x24e   : > { %1080 = dma.done.wait (%p929_p8), %s829_s16, 192  }
 0x24f   : > { %1082 = vsyncadd (%p929_p8), %s829_s16, 4294967104  ;;  %p18_p10 = scmp.ge.s32.totalorder %s1163_s24, 4   ;;  %s1488_s18 = smov %s1089_s19 }
 0x250   : > { %s1489_s19 = smov %s1093_s20  ;;  %s1490_s20 = smov %s1175_s27 }
 0x251   : > { %s1491_s21 = smov %s1163_s24  ;;  %20 = sbr.rel (!%p18_p10) target bundleno = 5 (0x5), region = 99 }
 0x256   :  { %835 = vsyncpa [#allocation4], 1 }
 0x257   :  { %837 = vsyncpa [#allocation4 + $0x1], 1 }
 0x258   :  { %838 = vsyncpa [#allocation5], 1 }
 0x259   :  { %840 = vsyncpa [#allocation5 + $0x1], 1 }

</bundles_post_ra>
